<compile_context>
chip_gen: v6e
topology: v6e:2x2x1
jax: 0.10.0
libtpu: 0.0.40
codegen_flags: <defaults>
</compile_context>

<pallas_src>
import jax
import jax.numpy as jnp
from jax.experimental import pallas as pl
from jax.experimental.pallas import tpu as pltpu


# ----------------------------- Pallas kernel -------------------------------

def _activation_fn(name):
    if name == "tanh":
        return jnp.tanh
    if name == "sigmoid":
        return jax.nn.sigmoid
    if name == "relu":
        return lambda v: jnp.maximum(v, 0.0)
    return lambda v: v          # activate_function=None


def _make_kernel(num_layers, activation, matmul_dtype):
    """Fused multi-layer CGCN kernel (one graph per grid step).

    Kernel signature:
        (lw_ref[SMEM], x_ref, adj_ref, w_0, ..., w_{L-1}, out_slab_ref)
    """
    act = _activation_fn(activation)

    def kernel(lw_ref, x_ref, adj_ref, *refs):
        w_refs = refs[:num_layers]
        out_ref = refs[num_layers]

        adj = adj_ref[...]                       # (N, N), already matmul dtype
        x = x_ref[...]                           # (N, D_in), f32 features
        outs = []
        for i in range(num_layers):
            w = w_refs[i][...]                   # (D_in_i, D_out), matmul dtype
            # adj @ (X @ W^T): bf16 MXU operands, f32 accumulation.
            xw = jnp.dot(x.astype(matmul_dtype), w,
                         preferred_element_type=jnp.float32)
            h = jnp.dot(adj, xw.astype(matmul_dtype),
                        preferred_element_type=jnp.float32)
            h = act(h)                           # element-wise in f32
            x = h                                # chained input stays in VMEM
            outs.append(h * lw_ref[i])           # layer weight from SMEM
        # single lane-dense-ish store of all weighted layer outputs
        out_ref[...] = jnp.concatenate(outs, axis=-1).astype(out_ref.dtype)

    return kernel


# ------------------------- SGAlign_with_weights ----------------------------

def sgalign_forward_batched(adj, feature, gcn_weights, layer_weights,
                            activation="tanh", matmul_dtype=jnp.bfloat16):
    """Batched forward.

    adj:     (B, N, N) float32
    feature: (B, N, D_in) float32
    gcn_weights[i]: (D_out, D_in_i)  (torch nn.Linear layout)
    Returns a list of L arrays of shape (B, N, D_out): the weighted per-layer
    outputs (same semantics as SGAlign_with_weights.forward, batched).
    """
    num_layers = len(gcn_weights)
    assert num_layers == len(layer_weights)
    b, n, d_in = feature.shape
    d_out = gcn_weights[0].shape[0]

    # One-time wrapper-side prep: transpose static weights to (D_in, D_out)
    # and cast the matmul-only operands (adj, W) to the matmul dtype.
    w_t = [jnp.asarray(w).T.astype(matmul_dtype) for w in gcn_weights]
    adj_mm = jnp.asarray(adj).astype(matmul_dtype)
    lw = jnp.asarray(layer_weights, jnp.float32).reshape(num_layers)
    feature = jnp.asarray(feature, jnp.float32)

    kernel = _make_kernel(num_layers, activation, matmul_dtype)

    # Advisory cost estimate for the XLA scheduler.
    flops = 0
    for w in gcn_weights:
        do, di = w.shape
        flops += 2 * n * di * do + 2 * n * n * do
    flops *= b
    transcendentals = (b * n * d_out * num_layers
                       if activation in ("tanh", "sigmoid") else 0)
    bytes_accessed = (feature.size * feature.dtype.itemsize
                      + adj_mm.size * adj_mm.dtype.itemsize
                      + sum(int(w.size) * w.dtype.itemsize for w in w_t)
                      + lw.size * 4
                      + b * n * num_layers * d_out * 4)

    in_specs = [
        pl.BlockSpec(memory_space=pltpu.MemorySpace.SMEM),        # layer_weights
        pl.BlockSpec((None, n, d_in), lambda i: (i, 0, 0)),       # per-graph X
        pl.BlockSpec((None, n, n), lambda i: (i, 0, 0)),          # per-graph adj
    ] + [
        pl.BlockSpec(tuple(w.shape), lambda i: (0, 0)) for w in w_t   # resident W
    ]
    out_spec = pl.BlockSpec((None, n, num_layers * d_out), lambda i: (i, 0, 0))

    slab = pl.pallas_call(
        kernel,
        grid=(b,),
        in_specs=in_specs,
        out_specs=out_spec,
        out_shape=jax.ShapeDtypeStruct((b, n, num_layers * d_out), jnp.float32),
        compiler_params=pltpu.CompilerParams(
            dimension_semantics=("parallel",)),
        cost_estimate=pl.CostEstimate(flops=flops,
                                      transcendentals=transcendentals,
                                      bytes_accessed=bytes_accessed),
    )(lw, feature, adj_mm, *w_t)

    # Split the stacked slab back into per-layer outputs.
    return [slab[..., i * d_out:(i + 1) * d_out] for i in range(num_layers)]


def sgalign_forward(adj, feature, gcn_weights, layer_weights,
                    activation="tanh", matmul_dtype=jnp.bfloat16):
    """Single-graph forward, matching SGAlign_with_weights.forward(adj, net)."""
    outs = sgalign_forward_batched(adj[None], feature[None], gcn_weights,
                                   layer_weights, activation, matmul_dtype)
    return [o[0] for o in outs]


# ------------------------------- init helpers ------------------------------

def xavier_uniform(key, shape, gain):
    # torch: W shape (fan_out, fan_in); bound = gain * sqrt(6 / (fan_in + fan_out))
    fan_out, fan_in = shape
    bound = gain * (6.0 / (fan_in + fan_out)) ** 0.5
    return jax.random.uniform(key, shape, jnp.float32, -bound, bound)


def build_params(key, gcn_num_blocks, input_dim, output_dim, gain):
    weights = []
    for i in range(gcn_num_blocks):
        key, sub = jax.random.split(key)
        d_in = input_dim if i == 0 else output_dim
        weights.append(xavier_uniform(sub, (output_dim, d_in), gain))
    return weights


# ------------------------------- references --------------------------------

def reference_matched(adj, x, gcn_weights, layer_weights, mm_dtype=jnp.bfloat16):
    """Pure-JAX reference replicating the kernel's bf16-matmul / f32-accum casts."""
    adj_mm = adj.astype(mm_dtype)
    outs = []
    for i, w in enumerate(gcn_weights):
        w_mm = w.T.astype(mm_dtype)
        xw = jnp.dot(x.astype(mm_dtype), w_mm, preferred_element_type=jnp.float32)
        h = jnp.dot(adj_mm, xw.astype(mm_dtype), preferred_element_type=jnp.float32)
        x = jnp.tanh(h)
        outs.append(x * layer_weights[i])
    return outs


def reference_f32(adj, x, gcn_weights, layer_weights):
    """Pure-f32 reference with exact PyTorch semantics: adj @ (X @ W^T)."""
    outs = []
    for i, w in enumerate(gcn_weights):
        x = jnp.tanh(adj @ (x @ w.T))
        outs.append(x * layer_weights[i])
    return outs


# ----------------------------------- main -----------------------------------

if __name__ == "__main__":
    # synthetic instantiation:
    #   GCN_num_blocks=2, activate_function='tanh', output_dim=32
    #   features: (B=4 graphs, N=16 nodes, input_dim=8), adj: (B, 16, 16)
    GCN_num_blocks = 2
    B = 4
    N = 16
    input_dim = 8
    output_dim = 32
    tanh_gain = 5.0 / 3.0                      # init.calculate_gain('tanh')
    layer_weights_init = [0.7, 0.3]

    key = jax.random.PRNGKey(0)
    k_feat, k_adj, k_w = jax.random.split(key, 3)

    feats = jax.random.normal(k_feat, (B, N, input_dim), jnp.float32)
    a = jax.random.uniform(k_adj, (B, N, N), jnp.float32)
    adjs = (a + jnp.swapaxes(a, 1, 2)) * 0.5 / N     # symmetric dense adjacency

    gcn_weights = build_params(k_w, GCN_num_blocks, input_dim, output_dim, tanh_gain)

    # batched fused kernel call (one pallas_call, grid over graphs)
    outputs = sgalign_forward_batched(adjs, feats, gcn_weights,
                                      layer_weights_init, activation="tanh")
    outputs = [jax.block_until_ready(o) for o in outputs]

    # correctness: per-graph checks against matched-cast and pure-f32 references
    for bi in range(B):
        refs_mm = reference_matched(adjs[bi], feats[bi], gcn_weights,
                                    layer_weights_init)
        refs_f32 = reference_f32(adjs[bi], feats[bi], gcn_weights,
                                 layer_weights_init)
        for li in range(GCN_num_blocks):
            got = outputs[li][bi]
            assert got.shape == (N, output_dim)
            assert jnp.allclose(got, refs_mm[li], atol=1e-3, rtol=1e-3), \
                float(jnp.max(jnp.abs(got - refs_mm[li])))
            assert jnp.allclose(got, refs_f32[li], atol=5e-2, rtol=5e-2), \
                float(jnp.max(jnp.abs(got - refs_f32[li])))

    # also exercise the single-graph (module-equivalent) wrapper
    single = sgalign_forward(adjs[0], feats[0], gcn_weights, layer_weights_init)
    single = [jax.block_until_ready(o) for o in single]
    for li in range(GCN_num_blocks):
        assert jnp.allclose(single[li], outputs[li][0], atol=1e-6, rtol=1e-6)

    print("KERNEL_OK")
</pallas_src>

<mosaic_0001>
module attributes {stable_mosaic.version = 11 : i64} {
  func.func @kernel(%arg0: i32, %arg1: memref<2xf32, #tpu.memory_space<smem>>, %arg2: memref<1x16x8xf32, #tpu.memory_space<vmem>>, %arg3: memref<1x16x16xbf16, #tpu.memory_space<vmem>>, %arg4: memref<8x32xbf16, #tpu.memory_space<vmem>>, %arg5: memref<32x32xbf16, #tpu.memory_space<vmem>>, %arg6: memref<1x16x64xf32, #tpu.memory_space<vmem>>) attributes {dimension_semantics = [#tpu.dimension_semantics<parallel>], iteration_bounds = array<i64: 4>, scalar_prefetch = 0 : i64, scratch_operands = 0 : i64, tpu.core_type = #tpu.core_type<tc>, window_params = [{transform_indices = @transform_0, window_bounds = array<i64: 2>}, {transform_indices = @transform_1, window_bounds = array<i64: 1, 16, 8>}, {transform_indices = @transform_2, window_bounds = array<i64: 1, 16, 16>}, {pipeline_mode = #tpu.pipeline_mode<synchronous>, transform_indices = @transform_3, window_bounds = array<i64: 8, 32>}, {pipeline_mode = #tpu.pipeline_mode<synchronous>, transform_indices = @transform_4, window_bounds = array<i64: 32, 32>}, {transform_indices = @transform_5, window_bounds = array<i64: 1, 16, 64>}]} {
    %c0 = arith.constant 0 : index
    %c0_0 = arith.constant 0 : index
    %c0_1 = arith.constant 0 : index
    %0 = vector.load %arg3[%c0, %c0_0, %c0_1] : memref<1x16x16xbf16, #tpu.memory_space<vmem>>, vector<1x16x16xbf16>
    %1 = vector.shape_cast %0 : vector<1x16x16xbf16> to vector<16x16xbf16>
    %c0_2 = arith.constant 0 : index
    %c0_3 = arith.constant 0 : index
    %c0_4 = arith.constant 0 : index
    %2 = vector.load %arg2[%c0_2, %c0_3, %c0_4] : memref<1x16x8xf32, #tpu.memory_space<vmem>>, vector<1x16x8xf32>
    %3 = vector.shape_cast %2 : vector<1x16x8xf32> to vector<16x8xf32>
    %c0_5 = arith.constant 0 : index
    %c0_6 = arith.constant 0 : index
    %4 = vector.load %arg4[%c0_5, %c0_6] : memref<8x32xbf16, #tpu.memory_space<vmem>>, vector<8x32xbf16>
    %5 = arith.truncf %3 : vector<16x8xf32> to vector<16x8xbf16>
    %cst = arith.constant dense<0.000000e+00> : vector<16x32xf32>
    %6 = tpu.matmul %5, %4, %cst {dimension_numbers = #tpu.dot_dimension_numbers<[1], [0], [0], [1], [0, 0, 1, 1], [], []>} : vector<16x8xbf16>, vector<8x32xbf16>, vector<16x32xf32> -> vector<16x32xf32>
    %7 = arith.truncf %6 : vector<16x32xf32> to vector<16x32xbf16>
    %cst_7 = arith.constant dense<0.000000e+00> : vector<16x32xf32>
    %8 = tpu.matmul %1, %7, %cst_7 {dimension_numbers = #tpu.dot_dimension_numbers<[1], [0], [0], [1], [0, 0, 1, 1], [], []>} : vector<16x16xbf16>, vector<16x32xbf16>, vector<16x32xf32> -> vector<16x32xf32>
    %9 = math.tanh %8 : vector<16x32xf32>
    %c0_8 = arith.constant 0 : index
    %10 = memref.load %arg1[%c0_8] : memref<2xf32, #tpu.memory_space<smem>>
    %11 = vector.broadcast %10 : f32 to vector<16x32xf32>
    %12 = arith.mulf %9, %11 : vector<16x32xf32>
    %c0_9 = arith.constant 0 : index
    %c0_10 = arith.constant 0 : index
    %13 = vector.load %arg5[%c0_9, %c0_10] : memref<32x32xbf16, #tpu.memory_space<vmem>>, vector<32x32xbf16>
    %14 = arith.truncf %9 : vector<16x32xf32> to vector<16x32xbf16>
    %cst_11 = arith.constant dense<0.000000e+00> : vector<16x32xf32>
    %15 = tpu.matmul %14, %13, %cst_11 {dimension_numbers = #tpu.dot_dimension_numbers<[1], [0], [0], [1], [0, 0, 1, 1], [], []>} : vector<16x32xbf16>, vector<32x32xbf16>, vector<16x32xf32> -> vector<16x32xf32>
    %16 = arith.truncf %15 : vector<16x32xf32> to vector<16x32xbf16>
    %cst_12 = arith.constant dense<0.000000e+00> : vector<16x32xf32>
    %17 = tpu.matmul %1, %16, %cst_12 {dimension_numbers = #tpu.dot_dimension_numbers<[1], [0], [0], [1], [0, 0, 1, 1], [], []>} : vector<16x16xbf16>, vector<16x32xbf16>, vector<16x32xf32> -> vector<16x32xf32>
    %18 = math.tanh %17 : vector<16x32xf32>
    %c1 = arith.constant 1 : index
    %19 = memref.load %arg1[%c1] : memref<2xf32, #tpu.memory_space<smem>>
    %20 = vector.broadcast %19 : f32 to vector<16x32xf32>
    %21 = arith.mulf %18, %20 : vector<16x32xf32>
    %22 = tpu.concatenate %12, %21 in 1 : vector<16x32xf32>, vector<16x32xf32> -> vector<16x64xf32>
    %c0_13 = arith.constant 0 : index
    %c0_14 = arith.constant 0 : index
    %c0_15 = arith.constant 0 : index
    %23 = vector.load %arg6[%c0_13, %c0_14, %c0_15] : memref<1x16x64xf32, #tpu.memory_space<vmem>>, vector<1x16x64xf32>
    %24 = vector.shape_cast %23 : vector<1x16x64xf32> to vector<16x64xf32>
    %25 = vector.shape_cast %22 : vector<16x64xf32> to vector<1x16x64xf32>
    tpu.vector_store %arg6[%c0_13, %c0_14, %c0_15], %25 {strides = array<i32>} : memref<1x16x64xf32, #tpu.memory_space<vmem>>, vector<1x16x64xf32>,
    return
  }
  func.func @transform_0(%arg0: i32) -> i32 {
    %c0_i32 = arith.constant 0 : i32
    %c0_i32_0 = arith.constant 0 : i32
    return %c0_i32 : i32
  }
  func.func @transform_1(%arg0: i32) -> (i32, i32, i32) {
    %c0_i32 = arith.constant 0 : i32
    %c0_i32_0 = arith.constant 0 : i32
    %c0_i32_1 = arith.constant 0 : i32
    return %arg0, %c0_i32, %c0_i32_0 : i32, i32, i32
  }
  func.func @transform_2(%arg0: i32) -> (i32, i32, i32) {
    %c0_i32 = arith.constant 0 : i32
    %c0_i32_0 = arith.constant 0 : i32
    %c0_i32_1 = arith.constant 0 : i32
    return %arg0, %c0_i32, %c0_i32_0 : i32, i32, i32
  }
  func.func @transform_3(%arg0: i32) -> (i32, i32) {
    %c0_i32 = arith.constant 0 : i32
    %c0_i32_0 = arith.constant 0 : i32
    %c0_i32_1 = arith.constant 0 : i32
    return %c0_i32, %c0_i32_0 : i32, i32
  }
  func.func @transform_4(%arg0: i32) -> (i32, i32) {
    %c0_i32 = arith.constant 0 : i32
    %c0_i32_0 = arith.constant 0 : i32
    %c0_i32_1 = arith.constant 0 : i32
    return %c0_i32, %c0_i32_0 : i32, i32
  }
  func.func @transform_5(%arg0: i32) -> (i32, i32, i32) {
    %c0_i32 = arith.constant 0 : i32
    %c0_i32_0 = arith.constant 0 : i32
    %c0_i32_1 = arith.constant 0 : i32
    return %arg0, %c0_i32, %c0_i32_0 : i32, i32, i32
  }
}

</mosaic_0001>

<bundles_post_ra>
// kernel: tpu_custom_call.1
= control target key start
LH: loop header
LB: loop body
LE: loop exit
PB: predicated region body
PF: predicated region fallthrough
CT: control target
= control target key end

     0   :  { %10 = vsyncpa [#allocation4], 0  ;;  %s980_s0 = inlined_call_operand.vmem [shape: f32[2], index: 0, kind: input, shape index: {}]   ;;  %s981_s1 = inlined_call_operand.vmem [shape: f32[4,16,8], index: 1, kind: input, shape index: {}]   ;;  %s982_s2 = inlined_call_operand.vmem [shape: bf16[4,16,16], index: 2, kind: input, shape index: {}]   ;;  %s983_s3 = inlined_call_operand.vmem [shape: bf16[8,32], index: 3, kind: input, shape index: {}]   ;;  %s984_s4 = inlined_call_operand.vmem [shape: bf16[32,32], index: 4, kind: input, shape index: {}]   ;;  %s985_s5 = inlined_call_operand.hbm [shape: f32[4,16,64], index: 5, kind: output, shape index: {}]  }
   0x1   :  { %11 = vsyncpa [#allocation3], 0 }
   0x2   :  { %13 = vsyncpa [#allocation3 + $0x1], 0  ;;  %s839_s18 = smov 0   ;;  %s841_s19 = smov 0  }
   0x3   :  { %s843_s20 = smov 0   ;;  %s845_s21 = smov 0  }
   0x4 LB: > { %s860_s22 = sadd.s32 4294967295, %s800_s21   ;;  %s593_s23 = sadd.s32 4294967294, %s800_s21   ;;  %s800_s21 = sphi %s845_s21, %s992_s21   ;;  %s796_s20 = sphi %s843_s20, %s991_s20   ;;  %s792_s19 = sphi %s841_s19, %s990_s19   ;;  %s788_s18 = sphi %s839_s18, %s989_s18  }
   0x5   : > { %s864_s24 = sadd.s32 1, %s800_s21   ;;  %s141_s25 = sadd.s32 1, %s796_s20 }
   0x6   : > { %s138_s26 = ssub.s32 %s800_s21, %s864_s24  ;;  %p151_p0 = scmp.ne.s32.totalorder %s796_s20, %s792_s19 }
   0x7   : > { %p139_p1 = scmp.eq.s32.totalorder %s138_s26, 0  ;;  %p152_p2 = scmp.eq.s32.totalorder %s860_s22, 3 }
   0x8   : > { %p157_p3 = scmp.ne.s32.totalorder %s792_s19, %s788_s18  ;;  %p158_p4 = scmp.eq.s32.totalorder %s593_s23, 3 }
   0x9   : > { %s875_s27 = scalar_select %p139_p1, %s796_s20, %s141_s25  }
   0xa   : > { %p877_p5 = por %p152_p2, %p151_p0  ;;  %p881_p6 = por %p158_p4, %p157_p3 }
   0xb   : > { %p594_p7 = scmp.ge.s32.totalorder %s800_s21, 1  ;;  %p165_p8 = scmp.lt.s32.totalorder %s800_s21, 5 }
   0xc   : > { %p669_p9 = scmp.eq.s32.totalorder %s860_s22, 0  ;;  %s178_s8 = sshll.u32 %s980_s0, 4  ;;  %s179_s8 = int_to_ptr.vmem [resolvable:$true] %s178_s8 }
   0xd   : > { %p888_p10 = pnand %p594_p7, %p165_p8  ;;  %s721_s9 = scalar_lea.vmem %s179_s8, 16 }
   0xe   : > { %p722_p13 = scmp.ne.s32.totalorder %s179_s8, %s721_s9  ;;  %p729_p3 = scmp.lt.s32.totalorder %s179_s8, %s179_s8 }
   0xf   : > { %p661_p11 = pneg %p888_p10  ;;  %p730_p4 = scmp.lt.s32.totalorder %s721_s9, %s721_s9 }
  0x11   : > { %p662_p12 = pnand %p669_p9, %p661_p11  ;;  %p731_p7 = por %p730_p4, %p729_p3 }
  0x13   : > { %p723_p0 = pneg %p662_p12 }
  0x15   : > { %p724_p1 = pnand %p723_p0, %p722_p13 }
  0x17   : > { %p725_p2 = pneg %p724_p1 }
  0x19   : > { %p732_p8 = pnand %p731_p7, %p725_p2 }
  0x1b   : > { %735 = shalt.err (!%p732_p8)
}
  0x1c   : > { %s802_s10 = smov [#allocation2]   ;;  %213 = sbr.rel (%p888_p10) target bundleno = 1005 (0x3ed), region = 40 }
  0x1d   : > { %664 = dma.vmem_to_smem (!%p662_p12), %s179_s8, 16, %s802_s10, [#allocation4]  }
  0x21   : > { %779 = dma.done.wait (%p669_p9), [#allocation4], 16  }
  0x22   : > { %781 = vsyncadd (%p669_p9), [#allocation4], 4294967280 }
  0x23   : > { %219 = sfence }
  0x24   : > { %v262_v0 = vld [vmem:[%s983_s3] sm:$0xf]  ;;  %vm268_vm0 = vcmask 1043456   ;;  %p247_p11 = scmp.lt.s32.totalorder %s860_s22, 3  ;;  %v803_v1 = vmov 0.0   ;;  %vm804_vm1 = vmmov 0  }
  0x25   : > { %629 = vmatprep.subr.bf16.mxu0 %v803_v1  ;;  %v270_v2 = vsel %vm268_vm0, %v262_v0, 0  ;;  %631 = vmatprep.mubr.msk.bf16.mxu0 %vm804_vm1, %v803_v1  ;;  %vm264_vm2 = vcmask 64512   ;;  %vm319_vm3 = vcmask 130048   ;;  %v711_v12 = vld [vmem:[%s984_s4 + $0x8] sm:$0xff]   ;;  %v712_v13 = vld [vmem:[%s984_s4] sm:$0xff]   ;;  %vm387_vm4 = vcmask 261120  }
  0x26   : > { %630 = vmatpush3.bf16.msra.mxu0 %v270_v2  ;;  %s248_s13 = scalar_select %p247_p11, %s860_s22, 3  ;;  %635 = vmatprep.subr.bf16.mxu1 %v803_v1  ;;  %vm490_vm5 = vcmask 523264  }
  0x27   : > { %637 = vmatprep.mubr.msk.bf16.mxu1 %vm804_vm1, %v803_v1  ;;  %641 = vmatprep.subr.bf16.mxu0 %v803_v1  ;;  %s611_s10 = sld [smem:[#allocation2 + $0x1]]  ;;  %s805_s11 = smov 32  }
  0x28   : > { %s617_s14 = sshll.u32 %s248_s13, 4  ;;  %s618_s23 = sshll.u32 %s248_s13, 3 }
  0x29   : > { %s251_s17 = scalar_lea.vmem %s981_s1, %s617_s14  ;;  %s256_s30 = scalar_lea.vmem %s982_s2, %s618_s23 }
  0x2a   : > { %v260_v3 = vld [vmem:[%s251_s17] sm:$0xff]  ;;  %v261_v4 = vld [vmem:[%s251_s17 + $0x8] sm:$0xff]  ;;  %s366_s12 = sld [smem:[#allocation2]]  ;;  %s244_s13 = sand.u32 1, %s792_s19  }
  0x2b   : > { %v263_v5 = vpack.c.bf16 %v261_v4, %v260_v3  ;;  %v710_v11 = vld [vmem:[%s256_s30] sm:$0xff]   ;;  %s599_s14 = sshll.u32 %s244_s13, 4  ;;  %s619_s17 = sshll.u32 %s860_s22, 8 }
  0x2c   : > { %s246_s15 = scalar_lea.vmem [#allocation5], %s599_s14  ;;  %s937_s26 = scalar_lea.hbm %s985_s5, %s619_s17 }
  0x2d   : > { %632 = vmatmul.mubr.msk.bf16.vlgmr.msra.gmra.mxu0 %vm264_vm2, %v263_v5  ;;  %v477_v30 = vstv %s611_s10  ;;  %s507_s16 = sshll.u32 %s246_s15, 4  ;;  %s940_s30 = scalar_lea.sflag [#allocation3], %s244_s13  ;;  %s932_s16 = int_to_ptr.vmem [resolvable:$true] %s507_s16 }
  0x2e   : > { %645 = vmatprep.mubr.msk.bf16.mxu0 %vm804_vm1, %v803_v1  ;;  %642 = vmatpush3.bf16.msra.mxu0 %v711_v12  ;;  %s736_s22 = scalar_lea.vmem %s932_s16, 256  ;;  %s806_s6 = smov [#allocation5]  }
  0x2f   : > { %643 = vmatprep.subr.bf16.mxu0 %v803_v1  ;;  %p737_p9 = scmp.ne.s32.totalorder %s932_s16, %s736_s22  ;;  %s740_s7 = sshll.u32 %s806_s6, 4  ;;  %s741_s7 = int_to_ptr.vmem [resolvable:$false] %s740_s7 }
  0x30   : > { %v367_v35 = vstv %s366_s12  ;;  %s742_s8 = scalar_lea.vmem %s741_s7, 512  ;;  %p743_p13 = scmp.lt.s32.totalorder %s932_s16, %s741_s7 }
  0x31   : > { %p738_p10 = pnand %p737_p9, %p877_p5  ;;  %p744_p0 = scmp.lt.s32.totalorder %s742_s8, %s736_s22 }
  0x32   : > { %644 = vmatpush3.bf16.msra.mxu0 %v712_v13 }
  0x33   : > { %p739_p12 = pneg %p738_p10  ;;  %p745_p1 = por %p744_p0, %p743_p13 }
  0x35   : > { %p746_p2 = pnand %p745_p1, %p739_p12 }
  0xed   : > { %v306_v6 = vpop.f32.mrf.mxu0 }
  0xef   : > { %v633_v7 = vpop.f32.mrf.mxu0 }
  0xf1   : > { %v309_v8 = vpop.f32.mrf.mxu0 }
  0xf2   : > { %v313_v9 = vpack.c.bf16 %v309_v8, %v306_v6 }
  0xf3   : > { %v634_v10 = vpop.f32.mrf.mxu0 }
  0xf4   : > { %636 = vmatpush3.bf16.msra.mxu1 %v313_v9 }
  0xf5   : > { %649 = vmatprep.subr.bf16.mxu1 %v803_v1 }
  0xf7   : > { %638 = vmatmul.mubr.msk.bf16.vlgmr.msra.gmra.mxu1 %vm319_vm3, %v710_v11 }
  0xf8   : > { %651 = vmatprep.mubr.msk.bf16.mxu1 %vm804_vm1, %v803_v1 }
 0x1b7   : > { %v357_v14 = vpop.f32.mrf.mxu1 }
 0x1b8   : > { %713 = vtanh.f32 %v357_v14 }
 0x1b9   : > { %v639_v15 = vpop.f32.mrf.mxu1 }
 0x1bb   : > { %v360_v16 = vpop.f32.mrf.mxu1 }
 0x1bc   : > { %715 = vtanh.f32 %v360_v16 }
 0x1bd   : > { %v640_v17 = vpop.f32.mrf.mxu1 }
 0x1c5   : > { %v714_v18 = vpop.eup %713 }
 0x1c6   : > { %v368_v36 = vmul.f32 %v714_v18, %v367_v35 }
 0x1c9   : > { %v716_v19 = vpop.eup %715 }
 0x1ca   : > { %v374_v20 = vpack.c.bf16 %v716_v19, %v714_v18  ;;  %v369_v39 = vmul.f32 %v716_v19, %v367_v35 }
 0x1cc   : > { %646 = vmatmul.mubr.msk.bf16.vlgmr.msra.gmra.mxu0 %vm387_vm4, %v374_v20 }
 0x28c   : > { %v425_v21 = vpop.f32.mrf.mxu0 }
 0x28e   : > { %v647_v22 = vpop.f32.mrf.mxu0 }
 0x290   : > { %v428_v23 = vpop.f32.mrf.mxu0 }
 0x291   : > { %v432_v24 = vpack.c.bf16 %v428_v23, %v425_v21 }
 0x292   : > { %v648_v25 = vpop.f32.mrf.mxu0 }
 0x293   : > { %650 = vmatpush3.bf16.msra.mxu1 %v432_v24 }
 0x296   : > { %652 = vmatmul.mubr.msk.bf16.vlgmr.msra.gmra.mxu1 %vm319_vm3, %v710_v11 }
 0x356   : > { %v467_v26 = vpop.f32.mrf.mxu1 }
 0x357   : > { %717 = vtanh.f32 %v467_v26 }
 0x358   : > { %v653_v27 = vpop.f32.mrf.mxu1 }
 0x35a   : > { %v470_v28 = vpop.f32.mrf.mxu1 }
 0x35b   : > { %719 = vtanh.f32 %v470_v28 }
 0x35c   : > { %v654_v29 = vpop.f32.mrf.mxu1 }
 0x364   : > { %v718_v31 = vpop.eup %717 }
 0x365   : > { %v478_v32 = vmul.f32 %v718_v31, %v477_v30 }
 0x367   : > { %482 = vrot.lane.b32.xlu0 %v478_v32, %s805_s11 }
 0x368   : > { %v720_v33 = vpop.eup %719 }
 0x369   : > { %v479_v34 = vmul.f32 %v720_v33, %v477_v30 }
 0x36b   : > { %484 = vrot.lane.b32.xlu0 %v479_v34, %s805_s11 }
 0x3d9   : > { %v483_v37 = vpop.permute.xlu0 %482 }
 0x3da   : > { %v488_v38 = vsel %vm387_vm4, %v368_v36, %v483_v37 }
 0x3db   : > { %491 = vst.msk [vmem:[%s246_s15] sm:$0xff] %vm490_vm5, %v488_v38 }
 0x3dd   : > { %v485_v40 = vpop.permute.xlu0 %484 }
 0x3de   : > { %v489_v41 = vsel %vm387_vm4, %v369_v39, %v485_v40 }
 0x3df   : > { %492 = vst.msk [vmem:[%s246_s15 + $0x8] sm:$0xff] %vm490_vm5, %v489_v41 }
 0x3e0   : > { %749 = shalt.err (!%p746_p2)
}
 0x3e1   : > { %s750_s9 = scalar_lea.hbm %s937_s26, 256  ;;  %s754_s12 = scalar_lea.hbm %s985_s5, 1024 }
 0x3e2   : > { %p751_p3 = scmp.ne.s32.totalorder %s937_s26, %s750_s9  ;;  %p755_p8 = scmp.lt.s32.totalorder %s937_s26, %s985_s5 }
 0x3e3   : > { %p756_p11 = scmp.lt.s32.totalorder %s754_s12, %s750_s9 }
 0x3e4   : > { %p752_p4 = pnand %p751_p3, %p877_p5 }
 0x3e5   : > { %p757_p9 = por %p756_p11, %p755_p8 }
 0x3e6   : > { %p753_p7 = pneg %p752_p4 }
 0x3e8   : > { %p758_p10 = pnand %p757_p9, %p753_p7 }
 0x3ea   : > { %761 = shalt.err (!%p758_p10)
}
 0x3eb   : > { %s807_s15 = smov 128   ;;  %s808_s17 = smov 8  }
 0x3ec   : > { %659 = dma.vmem_to_hbm [thread:$0]  (%p877_p5), %s932_s16, 256, %s937_s26, %s940_s30, %s807_s15, %s807_s15, %s808_s17  }
 0x3ed PF: > { %p671_p12 = scmp.ge.s32.totalorder %s800_s21, 2  ;;  %s522_s23 = sand.u32 1, %s788_s18  }
 0x3ee   : > { %s523_s25 = scalar_lea.sflag [#allocation3], %s522_s23 }
 0x3ef   : > { %p666_p13 = pnand %p671_p12, %p881_p6 }
 0x3f1   : > { %p667_p0 = pneg %p666_p13 }
 0x3f3   : > { %783 = dma.done.wait (%p667_p0), %s523_s25, 256  }
 0x3f4   : > { %785 = vsyncadd (%p667_p0), %s523_s25, 4294967040  ;;  %p16_p1 = scmp.ge.s32.totalorder %s864_s24, 6   ;;  %s989_s18 = smov %s792_s19 }
 0x3f5   : > { %s990_s19 = smov %s796_s20  ;;  %s991_s20 = smov %s875_s27 }
 0x3f6   : > { %s992_s21 = smov %s864_s24  ;;  %18 = sbr.rel (!%p16_p1) target bundleno = 4 (0x4), region = 83 }
 0x3fb   :  { %528 = vsyncpa [#allocation3], 1 }
 0x3fc   :  { %530 = vsyncpa [#allocation3 + $0x1], 1 }
 0x3fd   :  { %531 = vsyncpa [#allocation4], 1 }
 0x3fe   :  { %533 = vsyncpa [#allocation4 + $0x1], 1 }

</bundles_post_ra>
